<compile_context>
chip_gen: v7x
topology: tpu7x:2x2x1
jax: 0.10.0
libtpu: 0.0.40
codegen_flags: <defaults>
</compile_context>

<pallas_src>
import functools

import numpy as np

import jax
import jax.numpy as jnp
from jax import lax
from jax.experimental import pallas as pl
from jax.experimental.pallas import tpu as pltpu

LANE = 128
_SUBLANE = 8
_AXIS_NAMES = ["x", "y", "z"]


# ---------------------------------------------------------------------------
# VMEM budgeting (generation-aware)
# ---------------------------------------------------------------------------
def _vmem_budget_bytes():
    """Return (working-set budget, scoped-vmem limit) in bytes."""
    cap = 64 * 1024 * 1024  # conservative fallback (v7x per-TC size)
    try:
        info = pltpu.get_tpu_info()
        cap_q = int(getattr(info, "vmem_capacity_bytes", 0))
        if cap_q > 0:
            cap = cap_q
    except Exception:
        pass
    # ~55% of physical VMEM for the double-buffered working set, capped.
    budget = max(8 << 20, min(int(cap * 0.55), 80 << 20))
    limit = min(cap, budget + (24 << 20))
    return budget, limit


def _round_up(x, m):
    return ((x + m - 1) // m) * m


def _choose_tile_rows(rows, n_buffers, budget):
    """Largest multiple-of-8 row tile whose double-buffered fused working set
    (n_buffers logical buffers of (tr, 128) f32) fits the VMEM budget."""
    per_row = 2 * n_buffers * LANE * 4  # double-buffered
    max_rows = max(_SUBLANE, (budget // per_row) // _SUBLANE * _SUBLANE)
    return min(max_rows, _round_up(rows, _SUBLANE))


# ---------------------------------------------------------------------------
# Fused frequency-domain filter kernel
# ---------------------------------------------------------------------------
def _spectral_filter_kernel(*refs, n_scales, imaginary):
    """Fused elementwise spectral filters.

    refs = (re, im, s_0 .. s_{n-1}, o0_re, o0_im, ..., o{n-1}_re, o{n-1}_im)

    imaginary=True  : filter is (j * s)  ->  out = (-s * im,  s * re)
    imaginary=False : filter is real  s  ->  out = ( s * re,  s * im)
    """
    re = refs[0][0]                       # (TR, LANE)
    im = refs[1][0]                       # (TR, LANE)
    scale_refs = refs[2:2 + n_scales]
    out_refs = refs[2 + n_scales:]
    for i, s_ref in enumerate(scale_refs):
        s = s_ref[...]
        if imaginary:
            out_refs[2 * i][0] = -s * im
            out_refs[2 * i + 1][0] = s * re
        else:
            out_refs[2 * i][0] = s * re
            out_refs[2 * i + 1][0] = s * im


def _apply_spectral_filters(u_h_re, u_h_im, scales, imaginary):
    """u_h_re / u_h_im : [BC, S] f32 planes of the (half) spectrum.
    scales            : list of [S] f32 frequency-scale fields (shared over BC).

    One fused pallas_call computes every derivative's (re, im) spectrum.
    Returns a list of (re, im) pairs, each [BC, S]."""
    bc, s_len = u_h_re.shape
    n_scales = len(scales)

    budget, vmem_limit = _vmem_budget_bytes()
    # logical buffers held in VMEM per grid step: 2 data in + n scales + 2n out
    n_buffers = 2 + n_scales + 2 * n_scales

    rows = -(-s_len // LANE)
    tr = _choose_tile_rows(rows, n_buffers, budget)
    rows_pad = _round_up(rows, tr)
    s_pad = rows_pad * LANE
    if s_pad != s_len:
        pad2 = ((0, 0), (0, s_pad - s_len))
        u_h_re = jnp.pad(u_h_re, pad2)
        u_h_im = jnp.pad(u_h_im, pad2)
        scales = [jnp.pad(sc, (0, s_pad - s_len)) for sc in scales]

    re_slab = u_h_re.reshape(bc, rows_pad, LANE)
    im_slab = u_h_im.reshape(bc, rows_pad, LANE)
    scale_slabs = [sc.reshape(rows_pad, LANE) for sc in scales]
    nblk = rows_pad // tr

    # bc is the innermost grid axis so the scale blocks (index depends only on
    # the row-block axis) stay resident across it and are fetched once.
    data_spec = pl.BlockSpec((1, tr, LANE), lambda i, b: (b, i, 0))
    scale_spec = pl.BlockSpec((tr, LANE), lambda i, b: (i, 0))

    kernel = functools.partial(
        _spectral_filter_kernel, n_scales=n_scales, imaginary=imaginary)

    elems = bc * rows_pad * LANE
    cost = pl.CostEstimate(
        flops=2 * n_scales * elems,
        transcendentals=0,
        bytes_accessed=4 * (2 * elems + n_scales * rows_pad * LANE
                            + 2 * n_scales * elems))

    outs = pl.pallas_call(
        kernel,
        out_shape=tuple(
            jax.ShapeDtypeStruct((bc, rows_pad, LANE), jnp.float32)
            for _ in range(2 * n_scales)),
        grid=(nblk, bc),
        in_specs=[data_spec, data_spec] + [scale_spec] * n_scales,
        out_specs=tuple(data_spec for _ in range(2 * n_scales)),
        compiler_params=pltpu.CompilerParams(
            dimension_semantics=("parallel", "parallel"),
            vmem_limit_bytes=int(vmem_limit)),
        cost_estimate=cost,
    )(re_slab, im_slab, *scale_slabs)

    results = []
    for i in range(n_scales):
        o_re = outs[2 * i].reshape(bc, s_pad)[:, :s_len]
        o_im = outs[2 * i + 1].reshape(bc, s_pad)[:, :s_len]
        results.append((o_re, o_im))
    return results


# ---------------------------------------------------------------------------
# The module
# ---------------------------------------------------------------------------
class GradientsSpectral:
    """Spatial derivatives via spectral (FFT) differentiation."""

    def __init__(self, invar, ell, dim=3, order=1, return_mixed_derivs=False):
        self.invar = invar
        self.ell = ell
        self.dim = dim
        self.order = order
        self.return_mixed_derivs = return_mixed_derivs
        if isinstance(self.ell, (float, int)):
            self.ell = [self.ell for _ in range(self.dim)]
        assert self.order < 3, "Derivatives only upto 2nd order are supported"
        assert len(self.ell) == self.dim, f"Mismatch in {self.dim} and {self.ell}"
        if self.return_mixed_derivs:
            assert self.dim > 1, "Mixed Derivatives only supported for 2D and 3D inputs"
            assert self.order == 2, "Mixed Derivatives not possible for first order derivatives"

    # ------------------------------------------------------------------
    # Frequency-scale fields on the rfft half-spectrum (device-side jnp,
    # built from tiny per-axis vectors).
    # ------------------------------------------------------------------
    def _spectral_scale_fields(self, n):
        pi = float(np.pi)
        dim = self.dim
        spec_shape = tuple(n[:-1]) + (n[-1] // 2 + 1,)
        cs = [2.0 * pi / self.ell[i] for i in range(dim)]

        k_ref, k_zero, k_nyq = [], [], []
        for i, nx in enumerate(n):
            k = np.concatenate(
                [np.arange(0, nx // 2, dtype=np.float32),
                 np.arange(-nx // 2, 0, dtype=np.float32)])
            if i == dim - 1:                      # rfft axis keeps 0..nx//2
                k = k[: nx // 2 + 1]
            kz = k.copy()
            kq = np.zeros_like(k)
            ny = nx // 2
            if nx % 2 == 0 and ny < k.shape[0]:
                kz[ny] = 0.0                      # Nyquist zeroed
                kq[ny] = k[ny]                    # Nyquist-only grid (= -nx/2)
            shape = [1] * dim
            shape[i] = k.shape[0]
            k_ref.append(jnp.asarray(k.reshape(shape)))
            k_zero.append(jnp.asarray(kz.reshape(shape)))
            k_nyq.append(jnp.asarray(kq.reshape(shape)))

        names, fields = [], []
        imaginary = False
        if self.order == 1:
            imaginary = True
            for i in range(dim):
                names.append(f"{self.invar}__{_AXIS_NAMES[i]}")
                fields.append(cs[i] * k_zero[i])
        elif self.order == 2:
            for i in range(dim):
                names.append(f"{self.invar}__{_AXIS_NAMES[i]}__{_AXIS_NAMES[i]}")
                fields.append(-((cs[i] * k_ref[i]) ** 2))
            if self.return_mixed_derivs:
                pairs = [(0, 1)] + ([(0, 2), (1, 2)] if dim == 3 else [])
                for (a, b) in pairs:
                    names.append(
                        f"{self.invar}__{_AXIS_NAMES[a]}__{_AXIS_NAMES[b]}")
                    fields.append(-(cs[a] * cs[b]) *
                                  (k_zero[a] * k_zero[b] + k_nyq[a] * k_nyq[b]))

        flat = [jnp.broadcast_to(f, spec_shape).reshape(-1).astype(jnp.float32)
                for f in fields]
        return names, flat, imaginary

    def forward(self, input_dict):
        u = input_dict[self.invar]
        n = tuple(u.shape[2:])
        assert len(n) == self.dim, (
            f"Expected a {self.dim + 2} dimensional tensor, "
            f"but got {u.ndim} dimensional tensor")
        b, c = u.shape[0], u.shape[1]
        axes = tuple(range(2, self.dim + 2))
        spec_shape = tuple(n[:-1]) + (n[-1] // 2 + 1,)
        s_len = int(np.prod(spec_shape))

        names, scale_flat, imaginary = self._spectral_scale_fields(n)
        if not names:
            return {}

        # TODO(synk): FFT/IFFT run as XLA ops (no Pallas FFT primitive).
        u_h = jnp.fft.rfftn(u, axes=axes)
        re = jnp.real(u_h).astype(jnp.float32).reshape(b * c, s_len)
        im = jnp.imag(u_h).astype(jnp.float32).reshape(b * c, s_len)

        filtered = _apply_spectral_filters(re, im, scale_flat, imaginary)

        result = {}
        for name, (o_re, o_im) in zip(names, filtered):
            w_h = lax.complex(o_re, o_im).reshape((b, c) + spec_shape)
            result[name] = jnp.fft.irfftn(w_h, s=n, axes=axes)
        if self.order == 2 and self.return_mixed_derivs:
            result[f"{self.invar}__y__x"] = result[f"{self.invar}__x__y"]
            if self.dim == 3:
                result[f"{self.invar}__z__x"] = result[f"{self.invar}__x__z"]
                result[f"{self.invar}__z__y"] = result[f"{self.invar}__y__z"]
        return result

    __call__ = forward


# ---------------------------------------------------------------------------
# Pure-JAX reference (literal transcription of the torch module) for checking
# ---------------------------------------------------------------------------
def _reference_spectral(u, invar, ell, dim, order, return_mixed):
    pi = float(np.pi)
    n = u.shape[2:]
    axes = tuple(range(2, dim + 2))
    u_h = jnp.fft.fftn(u, axes=axes)
    kx = []
    for i, nx in enumerate(n):
        k = np.concatenate([np.arange(0, nx // 2),
                            np.arange(-nx // 2, 0)]).astype(np.float32)
        shape = [1] * (i + 2) + [nx] + [1] * (dim - i - 1)
        kx.append(jnp.asarray(k.reshape(shape)))
    wx_h = [1j * kx[i] * u_h * (2 * pi / ell[i]) for i in range(dim)]
    axis_list = ["x", "y", "z"]
    result = {}
    if order == 1:
        for i in range(dim):
            result[f"{invar}__{axis_list[i]}"] = jnp.fft.ifftn(wx_h[i], axes=axes).real
    else:
        wxx_h = [1j * kx[i] * wx_h[i] * (2 * pi / ell[i]) for i in range(dim)]
        for i in range(dim):
            result[f"{invar}__{axis_list[i]}__{axis_list[i]}"] = (
                jnp.fft.ifftn(wxx_h[i], axes=axes).real)
        if return_mixed:
            def mixed(a, bb):
                w_h = -(2 * pi / ell[a]) * (2 * pi / ell[bb]) * kx[a] * kx[bb] * u_h
                return jnp.fft.ifftn(w_h, axes=axes).real
            result[f"{invar}__x__y"] = mixed(0, 1)
            result[f"{invar}__y__x"] = result[f"{invar}__x__y"]
            if dim == 3:
                result[f"{invar}__x__z"] = mixed(0, 2)
                result[f"{invar}__z__x"] = result[f"{invar}__x__z"]
                result[f"{invar}__y__z"] = mixed(1, 2)
                result[f"{invar}__z__y"] = result[f"{invar}__y__z"]
    return result


# ---------------------------------------------------------------------------
# Demo / correctness check
# ---------------------------------------------------------------------------
if __name__ == "__main__":
    key = jax.random.PRNGKey(0)
    k1, k2 = jax.random.split(key)

    # 3-D field: [batch=2, channel=2, 16, 16, 16]; 2-D field: [2, 2, 16, 16]
    u3 = jax.random.normal(k1, (2, 2, 16, 16, 16), dtype=jnp.float32)
    u2 = jax.random.normal(k2, (2, 2, 16, 16), dtype=jnp.float32)

    configs = [
        (u3, dict(invar="u", ell=1.0, dim=3, order=1)),
        (u3, dict(invar="u", ell=1.0, dim=3, order=2, return_mixed_derivs=True)),
        (u2, dict(invar="u", ell=[1.0, 2.0], dim=2, order=2, return_mixed_derivs=True)),
    ]

    for u, cfg in configs:
        mod = GradientsSpectral(**cfg)
        out = mod({"u": u})
        jax.block_until_ready(out)
        ref = _reference_spectral(u, cfg["invar"], mod.ell, cfg["dim"],
                                  cfg["order"], cfg.get("return_mixed_derivs", False))
        assert set(out.keys()) == set(ref.keys()), (set(out.keys()), set(ref.keys()))
        for name in sorted(ref.keys()):
            o = np.asarray(out[name])
            r = np.asarray(ref[name])
            assert o.shape == r.shape, (name, o.shape, r.shape)
            scale = float(np.max(np.abs(r))) + 1e-6
            err = float(np.max(np.abs(o - r)))
            assert err <= 2e-4 * scale + 1e-5, (cfg, name, err, scale)

    print("KERNEL_OK")
</pallas_src>

<mosaic_0001>
module attributes {stable_mosaic.version = 11 : i64} {
  func.func @_spectral_filter_kernel(%arg0: i32, %arg1: i32, %arg2: memref<1x24x128xf32, #tpu.memory_space<vmem>>, %arg3: memref<1x24x128xf32, #tpu.memory_space<vmem>>, %arg4: memref<24x128xf32, #tpu.memory_space<vmem>>, %arg5: memref<24x128xf32, #tpu.memory_space<vmem>>, %arg6: memref<24x128xf32, #tpu.memory_space<vmem>>, %arg7: memref<1x24x128xf32, #tpu.memory_space<vmem>>, %arg8: memref<1x24x128xf32, #tpu.memory_space<vmem>>, %arg9: memref<1x24x128xf32, #tpu.memory_space<vmem>>, %arg10: memref<1x24x128xf32, #tpu.memory_space<vmem>>, %arg11: memref<1x24x128xf32, #tpu.memory_space<vmem>>, %arg12: memref<1x24x128xf32, #tpu.memory_space<vmem>>) attributes {dimension_semantics = [#tpu.dimension_semantics<parallel>, #tpu.dimension_semantics<parallel>], iteration_bounds = array<i64: 1, 4>, scalar_prefetch = 0 : i64, scratch_operands = 0 : i64, tpu.core_type = #tpu.core_type<tc>, window_params = [{transform_indices = @transform_0, window_bounds = array<i64: 1, 24, 128>}, {transform_indices = @transform_1, window_bounds = array<i64: 1, 24, 128>}, {transform_indices = @transform_2, window_bounds = array<i64: 24, 128>}, {transform_indices = @transform_3, window_bounds = array<i64: 24, 128>}, {transform_indices = @transform_4, window_bounds = array<i64: 24, 128>}, {transform_indices = @transform_5, window_bounds = array<i64: 1, 24, 128>}, {transform_indices = @transform_6, window_bounds = array<i64: 1, 24, 128>}, {transform_indices = @transform_7, window_bounds = array<i64: 1, 24, 128>}, {transform_indices = @transform_8, window_bounds = array<i64: 1, 24, 128>}, {transform_indices = @transform_9, window_bounds = array<i64: 1, 24, 128>}, {transform_indices = @transform_10, window_bounds = array<i64: 1, 24, 128>}]} {
    %c0 = arith.constant 0 : index
    %c0_0 = arith.constant 0 : index
    %c0_1 = arith.constant 0 : index
    %0 = vector.load %arg2[%c0, %c0_0, %c0_1] : memref<1x24x128xf32, #tpu.memory_space<vmem>>, vector<1x24x128xf32>
    %1 = vector.shape_cast %0 : vector<1x24x128xf32> to vector<24x128xf32>
    %c0_2 = arith.constant 0 : index
    %c0_3 = arith.constant 0 : index
    %c0_4 = arith.constant 0 : index
    %2 = vector.load %arg3[%c0_2, %c0_3, %c0_4] : memref<1x24x128xf32, #tpu.memory_space<vmem>>, vector<1x24x128xf32>
    %3 = vector.shape_cast %2 : vector<1x24x128xf32> to vector<24x128xf32>
    %c0_5 = arith.constant 0 : index
    %c0_6 = arith.constant 0 : index
    %4 = vector.load %arg4[%c0_5, %c0_6] : memref<24x128xf32, #tpu.memory_space<vmem>>, vector<24x128xf32>
    %cst = arith.constant 0.000000e+00 : f32
    %5 = vector.broadcast %cst : f32 to vector<24x128xf32>
    %6 = arith.subf %5, %4 : vector<24x128xf32>
    %7 = arith.mulf %6, %3 : vector<24x128xf32>
    %c0_7 = arith.constant 0 : index
    %c0_8 = arith.constant 0 : index
    %c0_9 = arith.constant 0 : index
    %8 = vector.load %arg7[%c0_7, %c0_8, %c0_9] : memref<1x24x128xf32, #tpu.memory_space<vmem>>, vector<1x24x128xf32>
    %9 = vector.shape_cast %8 : vector<1x24x128xf32> to vector<24x128xf32>
    %10 = vector.shape_cast %7 : vector<24x128xf32> to vector<1x24x128xf32>
    tpu.vector_store %arg7[%c0_7, %c0_8, %c0_9], %10 {strides = array<i32>} : memref<1x24x128xf32, #tpu.memory_space<vmem>>, vector<1x24x128xf32>,
    %11 = arith.mulf %4, %1 : vector<24x128xf32>
    %c0_10 = arith.constant 0 : index
    %c0_11 = arith.constant 0 : index
    %c0_12 = arith.constant 0 : index
    %12 = vector.load %arg8[%c0_10, %c0_11, %c0_12] : memref<1x24x128xf32, #tpu.memory_space<vmem>>, vector<1x24x128xf32>
    %13 = vector.shape_cast %12 : vector<1x24x128xf32> to vector<24x128xf32>
    %14 = vector.shape_cast %11 : vector<24x128xf32> to vector<1x24x128xf32>
    tpu.vector_store %arg8[%c0_10, %c0_11, %c0_12], %14 {strides = array<i32>} : memref<1x24x128xf32, #tpu.memory_space<vmem>>, vector<1x24x128xf32>,
    %c0_13 = arith.constant 0 : index
    %c0_14 = arith.constant 0 : index
    %15 = vector.load %arg5[%c0_13, %c0_14] : memref<24x128xf32, #tpu.memory_space<vmem>>, vector<24x128xf32>
    %cst_15 = arith.constant 0.000000e+00 : f32
    %16 = vector.broadcast %cst_15 : f32 to vector<24x128xf32>
    %17 = arith.subf %16, %15 : vector<24x128xf32>
    %18 = arith.mulf %17, %3 : vector<24x128xf32>
    %c0_16 = arith.constant 0 : index
    %c0_17 = arith.constant 0 : index
    %c0_18 = arith.constant 0 : index
    %19 = vector.load %arg9[%c0_16, %c0_17, %c0_18] : memref<1x24x128xf32, #tpu.memory_space<vmem>>, vector<1x24x128xf32>
    %20 = vector.shape_cast %19 : vector<1x24x128xf32> to vector<24x128xf32>
    %21 = vector.shape_cast %18 : vector<24x128xf32> to vector<1x24x128xf32>
    tpu.vector_store %arg9[%c0_16, %c0_17, %c0_18], %21 {strides = array<i32>} : memref<1x24x128xf32, #tpu.memory_space<vmem>>, vector<1x24x128xf32>,
    %22 = arith.mulf %15, %1 : vector<24x128xf32>
    %c0_19 = arith.constant 0 : index
    %c0_20 = arith.constant 0 : index
    %c0_21 = arith.constant 0 : index
    %23 = vector.load %arg10[%c0_19, %c0_20, %c0_21] : memref<1x24x128xf32, #tpu.memory_space<vmem>>, vector<1x24x128xf32>
    %24 = vector.shape_cast %23 : vector<1x24x128xf32> to vector<24x128xf32>
    %25 = vector.shape_cast %22 : vector<24x128xf32> to vector<1x24x128xf32>
    tpu.vector_store %arg10[%c0_19, %c0_20, %c0_21], %25 {strides = array<i32>} : memref<1x24x128xf32, #tpu.memory_space<vmem>>, vector<1x24x128xf32>,
    %c0_22 = arith.constant 0 : index
    %c0_23 = arith.constant 0 : index
    %26 = vector.load %arg6[%c0_22, %c0_23] : memref<24x128xf32, #tpu.memory_space<vmem>>, vector<24x128xf32>
    %cst_24 = arith.constant 0.000000e+00 : f32
    %27 = vector.broadcast %cst_24 : f32 to vector<24x128xf32>
    %28 = arith.subf %27, %26 : vector<24x128xf32>
    %29 = arith.mulf %28, %3 : vector<24x128xf32>
    %c0_25 = arith.constant 0 : index
    %c0_26 = arith.constant 0 : index
    %c0_27 = arith.constant 0 : index
    %30 = vector.load %arg11[%c0_25, %c0_26, %c0_27] : memref<1x24x128xf32, #tpu.memory_space<vmem>>, vector<1x24x128xf32>
    %31 = vector.shape_cast %30 : vector<1x24x128xf32> to vector<24x128xf32>
    %32 = vector.shape_cast %29 : vector<24x128xf32> to vector<1x24x128xf32>
    tpu.vector_store %arg11[%c0_25, %c0_26, %c0_27], %32 {strides = array<i32>} : memref<1x24x128xf32, #tpu.memory_space<vmem>>, vector<1x24x128xf32>,
    %33 = arith.mulf %26, %1 : vector<24x128xf32>
    %c0_28 = arith.constant 0 : index
    %c0_29 = arith.constant 0 : index
    %c0_30 = arith.constant 0 : index
    %34 = vector.load %arg12[%c0_28, %c0_29, %c0_30] : memref<1x24x128xf32, #tpu.memory_space<vmem>>, vector<1x24x128xf32>
    %35 = vector.shape_cast %34 : vector<1x24x128xf32> to vector<24x128xf32>
    %36 = vector.shape_cast %33 : vector<24x128xf32> to vector<1x24x128xf32>
    tpu.vector_store %arg12[%c0_28, %c0_29, %c0_30], %36 {strides = array<i32>} : memref<1x24x128xf32, #tpu.memory_space<vmem>>, vector<1x24x128xf32>,
    return
  }
  func.func @transform_0(%arg0: i32, %arg1: i32) -> (i32, i32, i32) {
    %c0_i32 = arith.constant 0 : i32
    %c0_i32_0 = arith.constant 0 : i32
    return %arg1, %arg0, %c0_i32 : i32, i32, i32
  }
  func.func @transform_1(%arg0: i32, %arg1: i32) -> (i32, i32, i32) {
    %c0_i32 = arith.constant 0 : i32
    %c0_i32_0 = arith.constant 0 : i32
    return %arg1, %arg0, %c0_i32 : i32, i32, i32
  }
  func.func @transform_2(%arg0: i32, %arg1: i32) -> (i32, i32) {
    %c0_i32 = arith.constant 0 : i32
    %c0_i32_0 = arith.constant 0 : i32
    return %arg0, %c0_i32 : i32, i32
  }
  func.func @transform_3(%arg0: i32, %arg1: i32) -> (i32, i32) {
    %c0_i32 = arith.constant 0 : i32
    %c0_i32_0 = arith.constant 0 : i32
    return %arg0, %c0_i32 : i32, i32
  }
  func.func @transform_4(%arg0: i32, %arg1: i32) -> (i32, i32) {
    %c0_i32 = arith.constant 0 : i32
    %c0_i32_0 = arith.constant 0 : i32
    return %arg0, %c0_i32 : i32, i32
  }
  func.func @transform_5(%arg0: i32, %arg1: i32) -> (i32, i32, i32) {
    %c0_i32 = arith.constant 0 : i32
    %c0_i32_0 = arith.constant 0 : i32
    return %arg1, %arg0, %c0_i32 : i32, i32, i32
  }
  func.func @transform_6(%arg0: i32, %arg1: i32) -> (i32, i32, i32) {
    %c0_i32 = arith.constant 0 : i32
    %c0_i32_0 = arith.constant 0 : i32
    return %arg1, %arg0, %c0_i32 : i32, i32, i32
  }
  func.func @transform_7(%arg0: i32, %arg1: i32) -> (i32, i32, i32) {
    %c0_i32 = arith.constant 0 : i32
    %c0_i32_0 = arith.constant 0 : i32
    return %arg1, %arg0, %c0_i32 : i32, i32, i32
  }
  func.func @transform_8(%arg0: i32, %arg1: i32) -> (i32, i32, i32) {
    %c0_i32 = arith.constant 0 : i32
    %c0_i32_0 = arith.constant 0 : i32
    return %arg1, %arg0, %c0_i32 : i32, i32, i32
  }
  func.func @transform_9(%arg0: i32, %arg1: i32) -> (i32, i32, i32) {
    %c0_i32 = arith.constant 0 : i32
    %c0_i32_0 = arith.constant 0 : i32
    return %arg1, %arg0, %c0_i32 : i32, i32, i32
  }
  func.func @transform_10(%arg0: i32, %arg1: i32) -> (i32, i32, i32) {
    %c0_i32 = arith.constant 0 : i32
    %c0_i32_0 = arith.constant 0 : i32
    return %arg1, %arg0, %c0_i32 : i32, i32, i32
  }
}

</mosaic_0001>

<bundles_post_ra>
// kernel: tpu_custom_call.1
= control target key start
LH: loop header
LB: loop body
LE: loop exit
PB: predicated region body
PF: predicated region fallthrough
CT: control target
= control target key end

     0   :  { %s2308_s0 = inlined_call_operand.hbm [shape: f32[4,24,128], index: 0, kind: input, shape index: {}]   ;;  %s2309_s1 = inlined_call_operand.hbm [shape: f32[4,24,128], index: 1, kind: input, shape index: {}]   ;;  %s2310_s2 = inlined_call_operand.hbm [shape: f32[24,128], index: 2, kind: input, shape index: {}]   ;;  %s2311_s3 = inlined_call_operand.hbm [shape: f32[24,128], index: 3, kind: input, shape index: {}]   ;;  %s2312_s4 = inlined_call_operand.hbm [shape: f32[24,128], index: 4, kind: input, shape index: {}]   ;;  %s2313_s5 = inlined_call_operand.hbm [shape: f32[4,24,128], index: 5, kind: output, shape index: {0}]   ;;  %s2314_s6 = inlined_call_operand.hbm [shape: f32[4,24,128], index: 6, kind: output, shape index: {1}]   ;;  %s2315_s7 = inlined_call_operand.hbm [shape: f32[4,24,128], index: 7, kind: output, shape index: {2}]   ;;  %s2316_s8 = inlined_call_operand.hbm [shape: f32[4,24,128], index: 8, kind: output, shape index: {3}]   ;;  %s2317_s9 = inlined_call_operand.hbm [shape: f32[4,24,128], index: 9, kind: output, shape index: {4}]   ;;  %s2318_s10 = inlined_call_operand.hbm [shape: f32[4,24,128], index: 10, kind: output, shape index: {5}]  }
   0x1   :  { %2334 = sst [smem:[#allocation30_spill]] %s2308_s0 }
   0x2   :  { %2335 = sst [smem:[#allocation31_spill]] %s2309_s1 }
   0x3   :  { %2336 = sst [smem:[#allocation32_spill]] %s2310_s2 }
   0x4   :  { %2337 = sst [smem:[#allocation33_spill]] %s2311_s3 }
   0x5   :  { %2338 = sst [smem:[#allocation34_spill]] %s2312_s4 }
   0x6   :  { %2339 = sst [smem:[#allocation35_spill]] %s2313_s5 }
   0x7   :  { %2340 = sst [smem:[#allocation36_spill]] %s2314_s6 }
   0x8   :  { %2341 = sst [smem:[#allocation37_spill]] %s2315_s7 }
   0x9   :  { %2342 = sst [smem:[#allocation38_spill]] %s2316_s8 }
   0xa   :  { %2343 = sst [smem:[#allocation39_spill]] %s2317_s9 }
   0xb   :  { %2344 = sst [smem:[#allocation40_spill]] %s2318_s10 }
   0xc   :  { %16 = vsyncpa [#allocation3], 0 }
   0xd   :  { %18 = vsyncpa [#allocation3 + $0x1], 0 }
   0xe   :  { %19 = vsyncpa [#allocation6], 0 }
   0xf   :  { %21 = vsyncpa [#allocation6 + $0x1], 0 }
  0x10   :  { %22 = vsyncpa [#allocation9], 0 }
  0x11   :  { %23 = vsyncpa [#allocation4], 0 }
  0x12   :  { %25 = vsyncpa [#allocation4 + $0x1], 0 }
  0x13   :  { %26 = vsyncpa [#allocation13], 0 }
  0x14   :  { %28 = vsyncpa [#allocation13 + $0x1], 0 }
  0x15   :  { %29 = vsyncpa [#allocation16], 0 }
  0x16   :  { %31 = vsyncpa [#allocation16 + $0x1], 0 }
  0x17   :  { %32 = vsyncpa [#allocation19], 0 }
  0x18   :  { %34 = vsyncpa [#allocation19 + $0x1], 0  ;;  %s1701_s13 = smov 0   ;;  %s1703_s14 = smov 0  }
  0x19   :  { %s1705_s15 = smov 0   ;;  %s1707_s16 = smov 0  }
  0x1a   :  { %s1709_s17 = smov 0   ;;  %s1711_s18 = smov 0  }
  0x1b LB: > { %2345 = sst [smem:[#allocation28_spill]] %s1609_s13  ;;  %s1732_s19 = sadd.s32 4294967295, %s1629_s18   ;;  %s1629_s18 = sphi %s1711_s18, %s40_s18   ;;  %s1625_s17 = sphi %s1709_s17, %s2387_s17   ;;  %s1621_s16 = sphi %s1707_s16, %s2386_s16   ;;  %s1617_s15 = sphi %s1705_s15, %s2385_s15   ;;  %s1613_s14 = sphi %s1703_s14, %s2384_s14   ;;  %s1609_s13 = sphi %s1701_s13, %s2383_s13  }
  0x1c   : > { %s2319_s20 = sadd.s32 4294967294, %s1629_s18   ;;  %p74_p0 = scmp.ne.s32.totalorder %s1613_s14, %s1609_s13 }
  0x1d   : > { %p2322_p1 = scmp.eq.s32.totalorder %s1732_s19, 0  ;;  %p212_p3 = scmp.eq.s32.totalorder %s2319_s20, 3 }
  0x1e   : > { %p1082_p5 = scmp.ge.s32.totalorder %s1629_s18, 1  ;;  %p359_p7 = scmp.lt.s32.totalorder %s1629_s18, 5 }
  0x1f   : > { %p1743_p4 = por %p2322_p1, %p74_p0  ;;  %p1748_p6 = por %p212_p3, %p74_p0 }
  0x20   : > { %p1753_p8 = pnand %p1082_p5, %p359_p7  ;;  %s1631_s24 = smov [#allocation7]  }
  0x21   : > { %s2346_s21 = scalar_select %p1743_p4, 1, 0 }
  0x22   : > { %s2347_s22 = scalar_select %p1748_p6, 1, 0 }
  0x23   : > { %s2349_s23 = scalar_select %p1753_p8, 1, 0 }
  0x24   : > { %2348 = sst [smem:[#allocation29_spill]] %s2347_s22  ;;  %s374_s25 = sshll.u32 %s1631_s24, 4  ;;  %s1757_s25 = int_to_ptr.vmem [resolvable:$true] %s374_s25 }
  0x25   : > { %p1140_p9 = pneg %p1753_p8  ;;  %s1632_s27 = smov [#allocation8]  }
  0x26   : > { %s390_s28 = sshll.u32 %s1632_s27, 4  ;;  %s1633_s29 = smov [#allocation10]   ;;  %s1767_s28 = int_to_ptr.vmem [resolvable:$true] %s390_s28 }
  0x27   : > { %p1763_p10 = pnand %p1140_p9, %p2322_p1  ;;  %s1769_s30 = sshll.u32 %s1633_s29, 4  ;;  %s407_s30 = int_to_ptr.vmem [resolvable:$true] %s1769_s30 }
  0x28   : > { %s2351_s2 = sld [smem:[#allocation32_spill]] }
  0x29   : > { %p1779_p12 = pneg %p1763_p10 }
  0x2e   : > { %s1239_s24 = scalar_lea.hbm %s2351_s2, 384 }
  0x2f   : > { %p1240_p11 = scmp.ne.s32.totalorder %s2351_s2, %s1239_s24  ;;  %p1246_p3 = scmp.lt.u32.totalorder %s1239_s24, %s2351_s2 }
  0x31   : > { %p1242_p13 = pnand %p1779_p12, %p1240_p11 }
  0x33   : > { %p1243_p0 = pneg %p1242_p13 }
  0x35   : > { %p1248_p5 = pnand %p1246_p3, %p1243_p0 }
  0x37   : > { %1251 = shalt.err (!%p1248_p5)
}
  0x38   : > { %s1252_s20 = scalar_lea.vmem %s1757_s25, 384  ;;  %p1260_p2 = scmp.lt.s32.totalorder %s1757_s25, %s1757_s25 }
  0x39   : > { %p1253_p7 = scmp.ne.s32.totalorder %s1757_s25, %s1252_s20  ;;  %p1261_p6 = scmp.lt.s32.totalorder %s1252_s20, %s1252_s20 }
  0x3b   : > { %p1255_p9 = pnand %p1253_p7, %p1779_p12  ;;  %p1262_p11 = por %p1261_p6, %p1260_p2 }
  0x3d   : > { %p1256_p1 = pneg %p1255_p9 }
  0x3f   : > { %p1263_p13 = pnand %p1262_p11, %p1256_p1 }
  0x41   : > { %1266 = shalt.err (!%p1263_p13)
}
  0x42   : > { %s2329_s22 = smov 128   ;;  %s2331_s11 = smov 8  }
  0x43   : > { %1143 = dma.hbm_to_vmem [thread:$0]  (!%p1763_p10), %s2351_s2, 384, %s1757_s25, [#allocation6], %s2329_s22, %s2329_s22, %s2331_s11  }
  0x44   : > { %s2353_s3 = sld [smem:[#allocation33_spill]] }
  0x4a   : > { %s1267_s20 = scalar_lea.hbm %s2353_s3, 384 }
  0x4b   : > { %p1268_p1 = scmp.ne.s32.totalorder %s2353_s3, %s1267_s20  ;;  %p1274_p0 = scmp.lt.u32.totalorder %s1267_s20, %s2353_s3 }
  0x4d   : > { %p1270_p2 = pnand %p1268_p1, %p1779_p12 }
  0x4f   : > { %p1271_p6 = pneg %p1270_p2 }
  0x51   : > { %p1276_p3 = pnand %p1274_p0, %p1271_p6 }
  0x53   : > { %1279 = shalt.err (!%p1276_p3)
}
  0x54   : > { %s1280_s25 = scalar_lea.vmem %s1767_s28, 384  ;;  %p1288_p11 = scmp.lt.s32.totalorder %s1767_s28, %s1767_s28 }
  0x55   : > { %p1281_p5 = scmp.ne.s32.totalorder %s1767_s28, %s1280_s25  ;;  %p1289_p13 = scmp.lt.s32.totalorder %s1280_s25, %s1280_s25 }
  0x57   : > { %p1283_p7 = pnand %p1281_p5, %p1779_p12  ;;  %p1290_p1 = por %p1289_p13, %p1288_p11 }
  0x59   : > { %p1284_p9 = pneg %p1283_p7 }
  0x5b   : > { %p1291_p2 = pnand %p1290_p1, %p1284_p9 }
  0x5d   : > { %1294 = shalt.err (!%p1291_p2)
}
  0x5e   : > { %1146 = dma.hbm_to_vmem [thread:$0]  (!%p1763_p10), %s2353_s3, 384, %s1767_s28, [#allocation9], %s2329_s22, %s2329_s22, %s2331_s11  }
  0x5f   : > { %s2354_s4 = sld [smem:[#allocation34_spill]] }
  0x65   : > { %s1295_s12 = scalar_lea.hbm %s2354_s4, 384 }
  0x66   : > { %p1296_p6 = scmp.ne.s32.totalorder %s2354_s4, %s1295_s12  ;;  %p1302_p5 = scmp.lt.u32.totalorder %s1295_s12, %s2354_s4 }
  0x68   : > { %p1298_p0 = pnand %p1296_p6, %p1779_p12 }
  0x6a   : > { %p1299_p3 = pneg %p1298_p0 }
  0x6c   : > { %p1304_p7 = pnand %p1302_p5, %p1299_p3 }
  0x6e   : > { %1307 = shalt.err (!%p1304_p7)
}
  0x6f   : > { %s1308_s25 = scalar_lea.vmem %s407_s30, 384  ;;  %p1316_p1 = scmp.lt.s32.totalorder %s407_s30, %s407_s30 }
  0x70   : > { %p1309_p9 = scmp.ne.s32.totalorder %s407_s30, %s1308_s25  ;;  %p1317_p2 = scmp.lt.s32.totalorder %s1308_s25, %s1308_s25 }
  0x72   : > { %p1311_p11 = pnand %p1309_p9, %p1779_p12  ;;  %p1318_p4 = por %p1317_p2, %p1316_p1 }
  0x74   : > { %p1312_p13 = pneg %p1311_p11 }
  0x76   : > { %p1319_p8 = pnand %p1318_p4, %p1312_p13 }
  0x78   : > { %1322 = shalt.err (!%p1319_p8)
}
  0x79   : > { %1149 = dma.hbm_to_vmem [thread:$0]  (!%p1763_p10), %s2354_s4, 384, %s407_s30, [#allocation9], %s2329_s22, %s2329_s22, %s2331_s11  }
  0x7a   : > { %s61_s13 = sadd.s32 1, %s1617_s15  ;;  %s49_s26 = sadd.s32 1, %s1625_s17 }
  0x7b   : > { %p68_p4 = scmp.ne.s32.totalorder %s1617_s15, %s1613_s14  ;;  %p50_p8 = scmp.ge.s32.totalorder %s49_s26, 4 }
  0x7c   : > { %p69_p12 = scmp.eq.s32.totalorder %s1629_s18, 0  ;;  %p2355_p6 = scmp.eq.s32.totalorder %s1732_s19, 3 }
  0x7d   : > { %p1179_p3 = scmp.lt.s32.totalorder %s1629_s18, 4  ;;  %s2389_s26 = smov (%p50_p8, %s49_s26), 0 }
  0x7e   : > { %p1858_p0 = por %p2355_p6, %p68_p4  ;;  %p70_p5 = por %p69_p12, %p68_p4 }
  0x7f   : > { %s420_s9 = sand.u32 1, %s1617_s15   ;;  %s56_s30 = ssub.s32 %s1625_s17, %s2389_s26 }
  0x80   : > { %p59_p10 = scmp.eq.s32.totalorder %s56_s30, 0  ;;  %s1868_s10 = smul.u32 24, %s420_s9 }
  0x81   : > { %s2333_s12 = smul.u32 384, %s1625_s17  ;;  %p1871_p7 = pnand %p1179_p3, %p70_p5 }
  0x82   : > { %s1876_s27 = scalar_select %p59_p10, %s1617_s15, %s61_s13  }
  0x83   : > { %s2358_s0 = sld [smem:[#allocation30_spill]]  ;;  %s424_s28 = scalar_lea.vmem [#allocation2], %s1868_s10 }
  0x84   : > { %s433_s5 = sshll.u32 %s424_s28, 4  ;;  %s443_s30 = sand.u32 1, %s1629_s18   ;;  %s1886_s5 = int_to_ptr.vmem [resolvable:$true] %s433_s5 }
  0x85   : > { %s1889_s22 = scalar_lea.sflag [#allocation3], %s420_s9  ;;  %p1325_p11 = pneg %p1871_p7 }
  0x89   : > { %s1883_s25 = scalar_lea.hbm %s2358_s0, %s2333_s12  ;;  %s1328_s20 = scalar_lea.hbm %s2358_s0, 1536 }
  0x8a   : > { %s1323_s11 = scalar_lea.hbm %s1883_s25, 384  ;;  %p1329_p2 = scmp.lt.u32.totalorder %s1883_s25, %s2358_s0 }
  0x8b   : > { %p1324_p9 = scmp.ne.s32.totalorder %s1883_s25, %s1323_s11  ;;  %p1330_p4 = scmp.lt.u32.totalorder %s1328_s20, %s1323_s11 }
  0x8c   : > { %p1332_p12 = scmp.lt.u32.totalorder %s1323_s11, %s1883_s25 }
  0x8d   : > { %p1326_p13 = pnand %p1325_p11, %p1324_p9  ;;  %p1331_p8 = por %p1330_p4, %p1329_p2 }
  0x8f   : > { %p1327_p1 = pneg %p1326_p13  ;;  %p1333_p6 = por %p1332_p12, %p1331_p8 }
  0x91   : > { %p1334_p3 = pnand %p1333_p6, %p1327_p1 }
  0x93   : > { %1337 = shalt.err (!%p1334_p3)
}
  0x94   : > { %s1338_s9 = scalar_lea.vmem %s1886_s5, 384  ;;  %s1636_s28 = smov [#allocation2]  }
  0x95   : > { %p1339_p5 = scmp.ne.s32.totalorder %s1886_s5, %s1338_s9  ;;  %s1343_s13 = sshll.u32 %s1636_s28, 4  ;;  %s1344_s13 = int_to_ptr.vmem [resolvable:$false] %s1343_s13 }
  0x96   : > { %s1345_s2 = scalar_lea.vmem %s1344_s13, 768  ;;  %p1346_p13 = scmp.lt.s32.totalorder %s1886_s5, %s1344_s13 }
  0x97   : > { %p1341_p10 = pnand %p1339_p5, %p1325_p11  ;;  %p1347_p2 = scmp.lt.s32.totalorder %s1345_s2, %s1338_s9 }
  0x99   : > { %p1342_p9 = pneg %p1341_p10  ;;  %p1348_p4 = por %p1347_p2, %p1346_p13 }
  0x9b   : > { %p1349_p8 = pnand %p1348_p4, %p1342_p9 }
  0x9d   : > { %1352 = shalt.err (!%p1349_p8)
}
  0x9e   : > { %s2359_s11 = smov 8   ;;  %s2360_s12 = smov 128  }
  0x9f   : > { %1153 = dma.hbm_to_vmem [thread:$0]  (!%p1871_p7), %s1883_s25, 384, %s1886_s5, %s1889_s22, %s2360_s12, %s2360_s12, %s2359_s11  }
  0xa0   : > { %s2361_s29 = smul.u32 384, %s1625_s17  ;;  %s2362_s1 = sld [smem:[#allocation31_spill]] }
  0xa1   : > { %s447_s13 = scalar_lea.vmem [#allocation5], %s1868_s10  ;;  %s1932_s0 = scalar_lea.sflag [#allocation6], %s443_s30 }
  0xa2   : > { %s456_s2 = sshll.u32 %s447_s13, 4  ;;  %s1928_s2 = int_to_ptr.vmem [resolvable:$true] %s456_s2 }
  0xa6   : > { %s1925_s9 = scalar_lea.hbm %s2362_s1, %s2361_s29  ;;  %s1358_s5 = scalar_lea.hbm %s2362_s1, 1536 }
  0xa7   : > { %s1353_s3 = scalar_lea.hbm %s1925_s9, 384  ;;  %p1359_p3 = scmp.lt.u32.totalorder %s1925_s9, %s2362_s1 }
  0xa8   : > { %p1354_p1 = scmp.ne.s32.totalorder %s1925_s9, %s1353_s3  ;;  %p1360_p5 = scmp.lt.u32.totalorder %s1358_s5, %s1353_s3 }
  0xa9   : > { %p1362_p9 = scmp.lt.u32.totalorder %s1353_s3, %s1925_s9 }
  0xaa   : > { %p1356_p12 = pnand %p1354_p1, %p1325_p11  ;;  %p1361_p10 = por %p1360_p5, %p1359_p3 }
  0xac   : > { %p1357_p6 = pneg %p1356_p12  ;;  %p1363_p13 = por %p1362_p9, %p1361_p10 }
  0xae   : > { %p1364_p2 = pnand %p1363_p13, %p1357_p6 }
  0xb0   : > { %1367 = shalt.err (!%p1364_p2)
}
  0xb1   : > { %s1368_s10 = scalar_lea.vmem %s1928_s2, 384  ;;  %s1637_s30 = smov [#allocation5]  }
  0xb2   : > { %p1369_p4 = scmp.ne.s32.totalorder %s1928_s2, %s1368_s10  ;;  %s1373_s28 = sshll.u32 %s1637_s30, 4  ;;  %s1374_s28 = int_to_ptr.vmem [resolvable:$false] %s1373_s28 }
  0xb3   : > { %s1375_s13 = scalar_lea.vmem %s1374_s28, 768  ;;  %p1376_p12 = scmp.lt.s32.totalorder %s1928_s2, %s1374_s28 }
  0xb4   : > { %p1371_p8 = pnand %p1369_p4, %p1325_p11  ;;  %p1377_p3 = scmp.lt.s32.totalorder %s1375_s13, %s1368_s10 }
  0xb6   : > { %p1372_p1 = pneg %p1371_p8  ;;  %p1378_p5 = por %p1377_p3, %p1376_p12 }
  0xb8   : > { %p1379_p10 = pnand %p1378_p5, %p1372_p1 }
  0xba   : > { %1382 = shalt.err (!%p1379_p10)
}
  0xbb   : > { %1156 = dma.hbm_to_vmem [thread:$0]  (!%p1871_p7), %s1925_s9, 384, %s1928_s2, %s1932_s0, %s2360_s12, %s2360_s12, %s2359_s11  }
  0xbc   : > { %p2363_p11 = scmp.ne.s32.totalorder %s2349_s23, 0 }
  0xbd   : > { %s1964_s3 = sand.u32 (!%p2363_p11), 1, %s1613_s14   ;;  %p2364_p6 = scmp.ne.s32.totalorder (!%p2363_p11), %s2346_s21, 0 }
  0xbe   : > { %468 = sbr.rel (%p2363_p11) target bundleno = 359 (0x167), region = 40  ;;  %s471_s24 = scalar_lea.sflag (!%p2363_p11), [#allocation3], %s1964_s3 }
  0xbf   : > { %s1967_s22 = smul.u32 (!%p2363_p11), 24, %s1964_s3 }
  0xc1   : > { %s1971_s25 = scalar_lea.vmem (!%p2363_p11), [#allocation2], %s1967_s22 }
  0xc5   : > { %1576 = dma.done.wait (%p2364_p6), %s471_s24, 384  }
  0xc6   : > { %1578 = vsyncadd (%p2364_p6), %s471_s24, 4294966912  ;;  %s1978_s0 = sand.u32 1, %s1732_s19   ;;  %s1982_s11 = scalar_lea.vmem [#allocation5], %s1967_s22 }
  0xc7   : > { %s480_s23 = scalar_lea.sflag [#allocation6], %s1978_s0 }
  0xc8   : > { %1580 = dma.done.wait (%p2364_p6), %s480_s23, 384  }
  0xc9   : > { %1582 = vsyncadd (%p2364_p6), %s480_s23, 4294966912  ;;  %p2365_p7 = scmp.eq.s32.totalorder %s1732_s19, 0 }
  0xcb   : > { %1584 = dma.done.wait (%p2365_p7), [#allocation6], 384   ;;  %p2366_p9 = pmov %p2365_p7 }
  0xcc   : > { %p2367_p13 = pmov %p2365_p7 }
  0xcd   : > { %1586 = vsyncadd (%p2366_p9), [#allocation6], 4294966912 }
  0xce   : > { %1588 = dma.done.wait (%p2367_p13), [#allocation9], 768   ;;  %p2368_p2 = pmov %p2365_p7 }
  0xcf   : > { %s1997_s21 = scalar_lea.vmem [#allocation12], %s1967_s22  ;;  %s2001_s9 = scalar_lea.vmem [#allocation15], %s1967_s22  ;;  %v573_v0 = vld [vmem:[%s1971_s25] sm:$0xff]  ;;  %v574_v2 = vld [vmem:[%s1971_s25 + $0x8] sm:$0xff]  ;;  %v2029_v5 = vld [vmem:[%s1971_s25 + $0x10] sm:$0xff] }
  0xd0   : > { %1590 = vsyncadd (%p2368_p2), [#allocation9], 4294966528  ;;  %s692_s12 = sshll.u32 %s1997_s21, 4  ;;  %s728_s2 = sshll.u32 %s2001_s9, 4  ;;  %v579_v1 = vld [vmem:[#allocation7] sm:$0xff]  ;;  %v580_v4 = vld [vmem:[#allocation7 + $0x8] sm:$0xff]  ;;  %s2004_s12 = int_to_ptr.vmem [resolvable:$true] %s692_s12  ;;  %s2006_s2 = int_to_ptr.vmem [resolvable:$true] %s728_s2 }
  0xd1   : > { %s2009_s19 = scalar_lea.vmem [#allocation11], %s1967_s22  ;;  %s2015_s29 = scalar_lea.vmem [#allocation14], %s1967_s22  ;;  %v591_v3 = vmul.f32 %v579_v1, %v573_v0  ;;  %v581_v6 = vld [vmem:[#allocation7 + $0x10] sm:$0xff]  ;;  %v582_v7 = vsub.f32 0.0, %v579_v1  ;;  %v592_v8 = vmul.f32 %v580_v4, %v574_v2  ;;  %v597_v10 = vld [vmem:[#allocation8] sm:$0xff]  ;;  %v598_v11 = vld [vmem:[#allocation8 + $0x8] sm:$0xff] }
  0xd2   : > { %s674_s5 = sshll.u32 %s2009_s19, 4  ;;  %s710_s20 = sshll.u32 %s2015_s29, 4  ;;  %v593_v9 = vmul.f32 %v581_v6, %v2029_v5  ;;  %v2036_v12 = vld [vmem:[#allocation8 + $0x10] sm:$0xff]  ;;  %v583_v13 = vsub.f32 0.0, %v580_v4  ;;  %v584_v14 = vsub.f32 0.0, %v581_v6  ;;  %v609_v15 = vmul.f32 %v597_v10, %v573_v0  ;;  %v577_v19 = vld [vmem:[%s1982_s11 + $0x8] sm:$0xff]  ;;  %s2012_s5 = int_to_ptr.vmem [resolvable:$true] %s674_s5  ;;  %s2031_s20 = int_to_ptr.vmem [resolvable:$true] %s710_s20 }
  0xd3   : > { %s2021_s10 = scalar_lea.vmem [#allocation17], %s1967_s22  ;;  %s2025_s28 = scalar_lea.vmem [#allocation18], %s1967_s22  ;;  %594 = vst [vmem:[%s1997_s21] sm:$0xff] %v591_v3  ;;  %v610_v16 = vmul.f32 %v598_v11, %v574_v2  ;;  %v611_v17 = vmul.f32 %v2036_v12, %v2029_v5  ;;  %v576_v18 = vld [vmem:[%s1982_s11] sm:$0xff]  ;;  %v2046_v20 = vld [vmem:[%s1982_s11 + $0x10] sm:$0xff]  ;;  %v600_v21 = vsub.f32 0.0, %v597_v10  ;;  %595 = vst [vmem:[%s1997_s21 + $0x8] sm:$0xff] %v592_v8 }
  0xd4   : > { %s746_s30 = sshll.u32 %s2021_s10, 4  ;;  %s764_s13 = sshll.u32 %s2025_s28, 4  ;;  %596 = vst [vmem:[%s1997_s21 + $0x10] sm:$0xff] %v593_v9  ;;  %v585_v22 = vmul.f32 %v582_v7, %v576_v18  ;;  %v586_v23 = vmul.f32 %v583_v13, %v577_v19  ;;  %v587_v24 = vmul.f32 %v584_v14, %v2046_v20  ;;  %v601_v25 = vsub.f32 0.0, %v598_v11  ;;  %v615_v26 = vld [vmem:[#allocation10] sm:$0xff]  ;;  %v616_v27 = vld [vmem:[#allocation10 + $0x8] sm:$0xff]  ;;  %612 = vst [vmem:[%s2001_s9] sm:$0xff] %v609_v15  ;;  %s2033_s30 = int_to_ptr.vmem [resolvable:$true] %s746_s30  ;;  %s2038_s13 = int_to_ptr.vmem [resolvable:$true] %s764_s13 }
  0xd5   : > { %s2049_s22 = smul.u32 384, %s1621_s16  ;;  %v2054_v28 = vld [vmem:[#allocation10 + $0x10] sm:$0xff]  ;;  %613 = vst [vmem:[%s2001_s9 + $0x8] sm:$0xff] %v610_v16  ;;  %614 = vst [vmem:[%s2001_s9 + $0x10] sm:$0xff] %v611_v17  ;;  %v603_v29 = vmul.f32 %v600_v21, %v576_v18  ;;  %v602_v30 = vsub.f32 0.0, %v2036_v12  ;;  %v618_v31 = vsub.f32 0.0, %v615_v26  ;;  %v2078_v35 = vmul.f32 %v615_v26, %v573_v0 }
  0xd6   : > { %v619_v32 = vsub.f32 0.0, %v616_v27  ;;  %s2369_s6 = sld [smem:[#allocation36_spill]]  ;;  %s2370_s8 = sld [smem:[#allocation38_spill]]  ;;  %588 = vst [vmem:[%s2009_s19] sm:$0xff] %v585_v22  ;;  %589 = vst [vmem:[%s2009_s19 + $0x8] sm:$0xff] %v586_v23  ;;  %v2075_v33 = vmul.f32 %v601_v25, %v577_v19  ;;  %v620_v34 = vsub.f32 0.0, %v2054_v28  ;;  %v2080_v36 = vmul.f32 %v616_v27, %v574_v2 }
  0xd7   : > { %590 = vst [vmem:[%s2009_s19 + $0x10] sm:$0xff] %v587_v24  ;;  %s1383_s16 = scalar_lea.vmem %s2004_s12, 384  ;;  %s1638_s24 = smov [#allocation12]  }
  0xd8   : > { %p1384_p4 = scmp.ne.s32.totalorder %s2004_s12, %s1383_s16  ;;  %s1387_s23 = sshll.u32 %s1638_s24, 4  ;;  %s1388_s23 = int_to_ptr.vmem [resolvable:$false] %s1387_s23 }
  0xd9   : > { %s1389_s11 = scalar_lea.vmem %s1388_s23, 768  ;;  %p1390_p12 = scmp.lt.s32.totalorder %s2004_s12, %s1388_s23 }
  0xda   : > { %p1385_p8 = pnand %p1384_p4, %p1858_p0  ;;  %p1391_p3 = scmp.lt.s32.totalorder %s1389_s11, %s1383_s16 }
  0xdc   : > { %s2064_s25 = scalar_lea.hbm %s2369_s6, %s2049_s22  ;;  %s2070_s21 = scalar_lea.hbm %s2370_s8, %s2049_s22 }
  0xdd   : > { %p1386_p1 = pneg %p1385_p8  ;;  %p1392_p5 = por %p1391_p3, %p1390_p12 }
  0xdf   : > { %p1393_p10 = pnand %p1392_p5, %p1386_p1 }
  0xe1   : > { %1396 = shalt.err (!%p1393_p10)
}
  0xe2   : > { %s1397_s19 = scalar_lea.hbm %s2064_s25, 384  ;;  %s1401_s24 = scalar_lea.hbm %s2369_s6, 1536 }
  0xe3   : > { %p1398_p11 = scmp.ne.s32.totalorder %s2064_s25, %s1397_s19  ;;  %p1402_p9 = scmp.lt.u32.totalorder %s2064_s25, %s2369_s6 }
  0xe4   : > { %p1403_p13 = scmp.lt.u32.totalorder %s1401_s24, %s1397_s19  ;;  %p1405_p4 = scmp.lt.u32.totalorder %s1397_s19, %s2064_s25 }
  0xe5   : > { %p1399_p6 = pnand %p1398_p11, %p1858_p0 }
  0xe6   : > { %p1404_p2 = por %p1403_p13, %p1402_p9 }
  0xe7   : > { %p1400_p7 = pneg %p1399_p6 }
  0xe8   : > { %p1406_p8 = por %p1405_p4, %p1404_p2 }
  0xea   : > { %p1407_p1 = pnand %p1406_p8, %p1400_p7 }
  0xec   : > { %1410 = shalt.err (!%p1407_p1)
}
  0xed   : > { %s1639_s16 = smov 128   ;;  %s1640_s1 = smov 8   ;;  %606 = vst [vmem:[%s2015_s29] sm:$0xff] %v603_v29  ;;  %v605_v37 = vmul.f32 %v602_v30, %v2046_v20  ;;  %v621_v38 = vmul.f32 %v618_v31, %v576_v18  ;;  %v622_v39 = vmul.f32 %v619_v32, %v577_v19  ;;  %v629_v40 = vmul.f32 %v2054_v28, %v2029_v5 }
  0xee   : > { %s2371_s4 = scalar_lea.sflag [#allocation13], %s1978_s0  ;;  %s1411_s11 = scalar_lea.vmem %s2006_s2, 384 }
  0xef   : > { %1129 = dma.vmem_to_hbm [thread:$0]  (%p1858_p0), %s2004_s12, 384, %s2064_s25, %s2371_s4, %s1639_s16, %s1639_s16, %s1640_s1  }
  0xf0   : > { %p1412_p12 = scmp.ne.s32.totalorder %s2006_s2, %s1411_s11  ;;  %s1641_s19 = smov [#allocation15]  }
  0xf1   : > { %s1415_s24 = sshll.u32 %s1641_s19, 4  ;;  %s1416_s24 = int_to_ptr.vmem [resolvable:$false] %s1415_s24 }
  0xf2   : > { %p1413_p3 = pnand %p1412_p12, %p1858_p0  ;;  %s1417_s23 = scalar_lea.vmem %s1416_s24, 768 }
  0xf3   : > { %p1418_p10 = scmp.lt.s32.totalorder %s2006_s2, %s1416_s24  ;;  %p1419_p11 = scmp.lt.s32.totalorder %s1417_s23, %s1411_s11 }
  0xf4   : > { %p1414_p5 = pneg %p1413_p3 }
  0xf5   : > { %p1420_p6 = por %p1419_p11, %p1418_p10 }
  0xf7   : > { %p1421_p7 = pnand %p1420_p6, %p1414_p5 }
  0xf9   : > { %1424 = shalt.err (!%p1421_p7)
}
  0xfa   : > { %s1425_s12 = scalar_lea.hbm %s2070_s21, 384  ;;  %s1429_s19 = scalar_lea.hbm %s2370_s8, 1536 }
  0xfb   : > { %p1426_p9 = scmp.ne.s32.totalorder %s2070_s21, %s1425_s12  ;;  %p1430_p4 = scmp.lt.u32.totalorder %s2070_s21, %s2370_s8 }
  0xfc   : > { %p1431_p8 = scmp.lt.u32.totalorder %s1429_s19, %s1425_s12  ;;  %p1433_p12 = scmp.lt.u32.totalorder %s1425_s12, %s2070_s21 }
  0xfd   : > { %p1427_p13 = pnand %p1426_p9, %p1858_p0 }
  0xfe   : > { %p1432_p1 = por %p1431_p8, %p1430_p4 }
  0xff   : > { %p1428_p2 = pneg %p1427_p13 }
 0x100   : > { %p1434_p3 = por %p1433_p12, %p1432_p1 }
 0x102   : > { %p1435_p5 = pnand %p1434_p3, %p1428_p2 }
 0x104   : > { %1438 = shalt.err (!%p1435_p5)
}
 0x105   : > { %s2372_s11 = scalar_lea.sflag [#allocation16], %s1978_s0  ;;  %607 = vst [vmem:[%s2015_s29 + $0x8] sm:$0xff] %v2075_v33  ;;  %v623_v41 = vmul.f32 %v620_v34, %v2046_v20  ;;  %630 = vst [vmem:[%s2025_s28] sm:$0xff] %v2078_v35  ;;  %s2373_s12 = sld [smem:[#allocation35_spill]] }
 0x106   : > { %1131 = dma.vmem_to_hbm [thread:$0]  (%p1858_p0), %s2006_s2, 384, %s2070_s21, %s2372_s11, %s1639_s16, %s1639_s16, %s1640_s1  }
 0x107   : > { %631 = vst [vmem:[%s2025_s28 + $0x8] sm:$0xff] %v2080_v36  ;;  %608 = vst [vmem:[%s2015_s29 + $0x10] sm:$0xff] %v605_v37  ;;  %s634_s2 = scalar_lea.sflag [#allocation4], %s1964_s3  ;;  %s1439_s21 = scalar_lea.vmem %s2012_s5, 384 }
 0x108   : > { %624 = vst [vmem:[%s2021_s10] sm:$0xff] %v621_v38  ;;  %625 = vst [vmem:[%s2021_s10 + $0x8] sm:$0xff] %v622_v39  ;;  %p1440_p10 = scmp.ne.s32.totalorder %s2012_s5, %s1439_s21  ;;  %s1642_s4 = smov [#allocation11]  }
 0x109   : > { %632 = vst [vmem:[%s2025_s28 + $0x10] sm:$0xff] %v629_v40  ;;  %s1443_s19 = sshll.u32 %s1642_s4, 4  ;;  %s1444_s19 = int_to_ptr.vmem [resolvable:$false] %s1443_s19 }
 0x10a   : > { %p1441_p11 = pnand %p1440_p10, %p1858_p0  ;;  %s1445_s24 = scalar_lea.vmem %s1444_s19, 768 }
 0x10b   : > { %s2153_s25 = scalar_lea.hbm %s2373_s12, %s2049_s22  ;;  %p1446_p7 = scmp.lt.s32.totalorder %s2012_s5, %s1444_s19 }
 0x10c   : > { %p1442_p6 = pneg %p1441_p11  ;;  %p1447_p9 = scmp.lt.s32.totalorder %s1445_s24, %s1439_s21 }
 0x10e   : > { %p1448_p13 = por %p1447_p9, %p1446_p7 }
 0x110   : > { %p1449_p2 = pnand %p1448_p13, %p1442_p6 }
 0x112   : > { %1452 = shalt.err (!%p1449_p2)
}
 0x113   : > { %s1453_s29 = scalar_lea.hbm %s2153_s25, 384  ;;  %s1457_s9 = scalar_lea.hbm %s2373_s12, 1536 }
 0x114   : > { %p1454_p4 = scmp.ne.s32.totalorder %s2153_s25, %s1453_s29  ;;  %p1458_p12 = scmp.lt.u32.totalorder %s2153_s25, %s2373_s12 }
 0x115   : > { %p1459_p3 = scmp.lt.u32.totalorder %s1457_s9, %s1453_s29  ;;  %p1461_p10 = scmp.lt.u32.totalorder %s1453_s29, %s2153_s25 }
 0x116   : > { %p1455_p8 = pnand %p1454_p4, %p1858_p0 }
 0x117   : > { %p1460_p5 = por %p1459_p3, %p1458_p12 }
 0x118   : > { %p1456_p1 = pneg %p1455_p8 }
 0x119   : > { %p1462_p11 = por %p1461_p10, %p1460_p5 }
 0x11b   : > { %p1463_p6 = pnand %p1462_p11, %p1456_p1 }
 0x11d   : > { %1466 = shalt.err (!%p1463_p6)
}
 0x11e   : > { %1128 = dma.vmem_to_hbm [thread:$0]  (%p1858_p0), %s2012_s5, 384, %s2153_s25, %s634_s2, %s1639_s16, %s1639_s16, %s1640_s1  }
 0x11f   : > { %626 = vst [vmem:[%s2021_s10 + $0x10] sm:$0xff] %v623_v41  ;;  %s2374_s24 = sld [smem:[#allocation37_spill]]  ;;  %s2375_s9 = sld [smem:[#allocation39_spill]] }
 0x120   : > { %s1467_s4 = scalar_lea.vmem %s2031_s20, 384  ;;  %s1643_s6 = smov [#allocation14]  }
 0x121   : > { %p1468_p7 = scmp.ne.s32.totalorder %s2031_s20, %s1467_s4  ;;  %s1471_s8 = sshll.u32 %s1643_s6, 4  ;;  %s1472_s8 = int_to_ptr.vmem [resolvable:$false] %s1471_s8 }
 0x122   : > { %s1473_s5 = scalar_lea.vmem %s1472_s8, 768  ;;  %p1474_p2 = scmp.lt.s32.totalorder %s2031_s20, %s1472_s8 }
 0x123   : > { %p1469_p9 = pnand %p1468_p7, %p1858_p0  ;;  %p1475_p4 = scmp.lt.s32.totalorder %s1473_s5, %s1467_s4 }
 0x125   : > { %s2191_s29 = scalar_lea.hbm %s2374_s24, %s2049_s22  ;;  %s2197_s23 = scalar_lea.hbm %s2375_s9, %s2049_s22 }
 0x126   : > { %p1470_p13 = pneg %p1469_p9  ;;  %p1476_p8 = por %p1475_p4, %p1474_p2 }
 0x128   : > { %p1477_p1 = pnand %p1476_p8, %p1470_p13 }
 0x12a   : > { %1480 = shalt.err (!%p1477_p1)
}
 0x12b   : > { %s1481_s10 = scalar_lea.hbm %s2191_s29, 384  ;;  %s1485_s6 = scalar_lea.hbm %s2374_s24, 1536 }
 0x12c   : > { %p1482_p12 = scmp.ne.s32.totalorder %s2191_s29, %s1481_s10  ;;  %p1486_p10 = scmp.lt.u32.totalorder %s2191_s29, %s2374_s24 }
 0x12d   : > { %p1487_p11 = scmp.lt.u32.totalorder %s1485_s6, %s1481_s10  ;;  %p1489_p7 = scmp.lt.u32.totalorder %s1481_s10, %s2191_s29 }
 0x12e   : > { %p1483_p3 = pnand %p1482_p12, %p1858_p0 }
 0x12f   : > { %p1488_p6 = por %p1487_p11, %p1486_p10 }
 0x130   : > { %p1484_p5 = pneg %p1483_p3 }
 0x131   : > { %p1490_p9 = por %p1489_p7, %p1488_p6 }
 0x133   : > { %p1491_p13 = pnand %p1490_p9, %p1484_p5 }
 0x135   : > { %1494 = shalt.err (!%p1491_p13)
}
 0x136   : > { %s2376_s19 = scalar_lea.sflag [#allocation13], %s1978_s0  ;;  %s1495_s28 = scalar_lea.vmem %s2033_s30, 384 }
 0x137   : > { %1130 = dma.vmem_to_hbm [thread:$0]  (%p1858_p0), %s2031_s20, 384, %s2191_s29, %s2376_s19, %s1639_s16, %s1639_s16, %s1640_s1  }
 0x138   : > { %p1496_p2 = scmp.ne.s32.totalorder %s2033_s30, %s1495_s28  ;;  %s1644_s11 = smov [#allocation17]  }
 0x139   : > { %s1499_s4 = sshll.u32 %s1644_s11, 4  ;;  %s1500_s4 = int_to_ptr.vmem [resolvable:$false] %s1499_s4 }
 0x13a   : > { %p1497_p4 = pnand %p1496_p2, %p1858_p0  ;;  %s1501_s5 = scalar_lea.vmem %s1500_s4, 768 }
 0x13b   : > { %p1502_p1 = scmp.lt.s32.totalorder %s2033_s30, %s1500_s4  ;;  %p1503_p12 = scmp.lt.s32.totalorder %s1501_s5, %s1495_s28 }
 0x13c   : > { %p1498_p8 = pneg %p1497_p4 }
 0x13d   : > { %p1504_p3 = por %p1503_p12, %p1502_p1 }
 0x13f   : > { %p1505_p5 = pnand %p1504_p3, %p1498_p8 }
 0x141   : > { %1508 = shalt.err (!%p1505_p5)
}
 0x142   : > { %s1509_s20 = scalar_lea.hbm %s2197_s23, 384  ;;  %s1513_s25 = scalar_lea.hbm %s2375_s9, 1536 }
 0x143   : > { %p1510_p10 = scmp.ne.s32.totalorder %s2197_s23, %s1509_s20  ;;  %p1514_p7 = scmp.lt.u32.totalorder %s2197_s23, %s2375_s9 }
 0x144   : > { %p1515_p9 = scmp.lt.u32.totalorder %s1513_s25, %s1509_s20  ;;  %p1517_p2 = scmp.lt.u32.totalorder %s1509_s20, %s2197_s23 }
 0x145   : > { %p1511_p11 = pnand %p1510_p10, %p1858_p0 }
 0x146   : > { %p1516_p13 = por %p1515_p9, %p1514_p7 }
 0x147   : > { %p1512_p6 = pneg %p1511_p11 }
 0x148   : > { %p1518_p4 = por %p1517_p2, %p1516_p13 }
 0x14a   : > { %p1519_p8 = pnand %p1518_p4, %p1512_p6 }
 0x14c   : > { %1522 = shalt.err (!%p1519_p8)
}
 0x14d   : > { %s2377_s21 = scalar_lea.sflag [#allocation16], %s1978_s0  ;;  %s2378_s28 = sld [smem:[#allocation40_spill]] }
 0x14e   : > { %1132 = dma.vmem_to_hbm [thread:$0]  (%p1858_p0), %s2033_s30, 384, %s2197_s23, %s2377_s21, %s1639_s16, %s1639_s16, %s1640_s1  }
 0x14f   : > { %s659_s4 = scalar_lea.sflag [#allocation19], %s1964_s3  ;;  %s1523_s5 = scalar_lea.vmem %s2038_s13, 384 }
 0x150   : > { %p1524_p1 = scmp.ne.s32.totalorder %s2038_s13, %s1523_s5  ;;  %s1645_s0 = smov [#allocation18]  }
 0x151   : > { %s1527_s20 = sshll.u32 %s1645_s0, 4  ;;  %s1528_s20 = int_to_ptr.vmem [resolvable:$false] %s1527_s20 }
 0x152   : > { %p1525_p12 = pnand %p1524_p1, %p1858_p0  ;;  %s1529_s29 = scalar_lea.vmem %s1528_s20, 768 }
 0x153   : > { %s2255_s11 = scalar_lea.hbm %s2378_s28, %s2049_s22  ;;  %p1530_p5 = scmp.lt.s32.totalorder %s2038_s13, %s1528_s20 }
 0x154   : > { %p1526_p3 = pneg %p1525_p12  ;;  %p1531_p10 = scmp.lt.s32.totalorder %s1529_s29, %s1523_s5 }
 0x156   : > { %p1532_p11 = por %p1531_p10, %p1530_p5 }
 0x158   : > { %p1533_p6 = pnand %p1532_p11, %p1526_p3 }
 0x15a   : > { %1536 = shalt.err (!%p1533_p6)
}
 0x15b   : > { %s1537_s30 = scalar_lea.hbm %s2255_s11, 384  ;;  %s1541_s10 = scalar_lea.hbm %s2378_s28, 1536 }
 0x15c   : > { %p1538_p7 = scmp.ne.s32.totalorder %s2255_s11, %s1537_s30  ;;  %p1542_p2 = scmp.lt.u32.totalorder %s2255_s11, %s2378_s28 }
 0x15d   : > { %p1543_p4 = scmp.lt.u32.totalorder %s1541_s10, %s1537_s30  ;;  %p1545_p1 = scmp.lt.u32.totalorder %s1537_s30, %s2255_s11 }
 0x15e   : > { %p1539_p9 = pnand %p1538_p7, %p1858_p0 }
 0x15f   : > { %p1544_p8 = por %p1543_p4, %p1542_p2 }
 0x160   : > { %p1540_p13 = pneg %p1539_p9 }
 0x161   : > { %p1546_p12 = por %p1545_p1, %p1544_p8 }
 0x163   : > { %p1547_p3 = pnand %p1546_p12, %p1540_p13 }
 0x165   : > { %1550 = shalt.err (!%p1547_p3)
}
 0x166   : > { %1133 = dma.vmem_to_hbm [thread:$0]  (%p1858_p0), %s2038_s13, 384, %s2255_s11, %s659_s4, %s1639_s16, %s1639_s16, %s1640_s1  }
 0x167 PF: > { %s2379_s6 = sld [smem:[#allocation28_spill]]  ;;  %s2380_s21 = sld [smem:[#allocation29_spill]] }
 0x168   : > { %p1183_p5 = scmp.ge.s32.totalorder %s1629_s18, 2 }
 0x16d   : > { %s779_s8 = sand.u32 1, %s2379_s6   ;;  %p2381_p10 = scmp.ne.s32.totalorder %s2380_s21, 0 }
 0x16e   : > { %s780_s19 = scalar_lea.sflag [#allocation4], %s779_s8 }
 0x16f   : > { %p1158_p11 = pnand %p1183_p5, %p2381_p10 }
 0x171   : > { %1592 = dma.done.wait (!%p1158_p11), %s780_s19, 384  }
 0x172   : > { %1594 = vsyncadd (!%p1158_p11), %s780_s19, 4294966912  ;;  %s2382_s7 = sadd.s32 4294967294, %s1629_s18  }
 0x173   : > { %s788_s5 = sand.u32 1, %s2382_s7  }
 0x174   : > { %s789_s0 = scalar_lea.sflag [#allocation13], %s788_s5 }
 0x175   : > { %1596 = dma.done.wait (!%p1158_p11), %s789_s0, 768  }
 0x176   : > { %1598 = vsyncadd (!%p1158_p11), %s789_s0, 4294966528  ;;  %s807_s3 = scalar_lea.sflag [#allocation16], %s788_s5 }
 0x177   : > { %1600 = dma.done.wait (!%p1158_p11), %s807_s3, 768  }
 0x178   : > { %1602 = vsyncadd (!%p1158_p11), %s807_s3, 4294966528  ;;  %s825_s13 = scalar_lea.sflag [#allocation19], %s779_s8 }
 0x179   : > { %1604 = dma.done.wait (!%p1158_p11), %s825_s13, 384  }
 0x17a   : > { %1606 = vsyncadd (!%p1158_p11), %s825_s13, 4294966912  ;;  %s40_s18 = sadd.s32 1, %s1629_s18   ;;  %s2383_s13 = smov %s1613_s14 }
 0x17b   : > { %p37_p0 = scmp.ge.s32.totalorder %s40_s18, 6   ;;  %s2384_s14 = smov %s1617_s15 }
 0x17c   : > { %s2385_s15 = smov %s1876_s27  ;;  %s2386_s16 = smov %s1625_s17 }
 0x17d   : > { %s2387_s17 = smov %s2389_s26  ;;  %39 = sbr.rel (!%p37_p0) target bundleno = 27 (0x1b), region = 194 }
 0x184   :  { %830 = vsyncpa [#allocation3], 1 }
 0x185   :  { %832 = vsyncpa [#allocation3 + $0x1], 1 }
 0x186   :  { %833 = vsyncpa [#allocation6], 1 }
 0x187   :  { %835 = vsyncpa [#allocation6 + $0x1], 1 }
 0x188   :  { %836 = vsyncpa [#allocation9], 1 }
 0x189   :  { %837 = vsyncpa [#allocation4], 1 }
 0x18a   :  { %839 = vsyncpa [#allocation4 + $0x1], 1 }
 0x18b   :  { %840 = vsyncpa [#allocation13], 1 }
 0x18c   :  { %842 = vsyncpa [#allocation13 + $0x1], 1 }
 0x18d   :  { %843 = vsyncpa [#allocation16], 1 }
 0x18e   :  { %845 = vsyncpa [#allocation16 + $0x1], 1 }
 0x18f   :  { %846 = vsyncpa [#allocation19], 1 }
 0x190   :  { %848 = vsyncpa [#allocation19 + $0x1], 1 }

</bundles_post_ra>
